<compile_context>
chip_gen: v5e
topology: v5e:2x2
jax: 0.10.0
libtpu: 0.0.40
codegen_flags: <defaults>
</compile_context>

<pallas_src>
import jax
import jax.numpy as jnp
from jax.experimental import pallas as pl
from jax.experimental.pallas import tpu as pltpu


def _round_up(x, m):
    return ((x + m - 1) // m) * m


def _vmem_capacity_bytes():
    try:
        return int(pltpu.get_tpu_info().vmem_capacity_bytes)
    except Exception:
        return 64 * 1024 * 1024          # conservative fallback (v7x physical)


def graph_regularized_loss(laplacian_matrix, weights_matrix, lambda_reg,
                           *, row_tile=None):
    """loss = lambda_reg * sum_i sum_j (L @ |w_i|)_j   (module forward)."""
    D = laplacian_matrix.shape[0]
    N, D2 = weights_matrix.shape
    assert laplacian_matrix.shape == (D, D) and D2 == D

    lap_itemsize = laplacian_matrix.dtype.itemsize
    vmem_cap = _vmem_capacity_bytes()

    # --- generation-aware row strip: biggest strip whose double-buffer fits
    # comfortably in scoped VMEM (the L strips dominate the budget). ---------
    if row_tile is None:
        budget = max(2 << 20, int(vmem_cap * 0.45))
        row_tile = budget // (2 * _round_up(D, 128) * lap_itemsize)
    if row_tile >= D:
        row_tile = D                              # one full-height block (legal:
                                                  # block dim == full array dim)
    else:
        row_tile = max(8, (row_tile // 8) * 8)    # tiled rows must be 8-aligned

    row_blocks = pl.cdiv(D, row_tile)
    # 2-way "parallel" row split (uses both v7x TensorCores); only when the
    # block count divides evenly so no grid point maps to a fully OOB block.
    if row_blocks >= 2 and row_blocks % 2 == 0:
        num_splits, steps = 2, row_blocks // 2
    else:
        num_splits, steps = 1, row_blocks
    needs_mask = (D % row_tile) != 0

    # --- tiny O(N*D) pre-reduction in plain XLA: lambda_reg * colsum(|W|). --
    sw = (jnp.float32(lambda_reg)
          * jnp.sum(jnp.abs(weights_matrix.astype(jnp.float32)),
                    axis=0, keepdims=True))                       # (1, D) f32

    def kernel(lap_ref, sw_ref, out_ref, acc_ref):
        i = pl.program_id(1)

        @pl.when(i == 0)
        def _init():
            acc_ref[...] = jnp.zeros_like(acc_ref)

        tile = lap_ref[...].astype(jnp.float32)
        if needs_mask:
            blk = pl.program_id(0) * steps + i
            row = (jax.lax.broadcasted_iota(jnp.int32, (row_tile, D), 0)
                   + blk * row_tile)
            tile = jnp.where(row < D, tile, 0.0)
        # Partial column sums of this L strip: pure VPU adds, hidden under DMA.
        acc_ref[...] += jnp.sum(tile, axis=0, keepdims=True)

        @pl.when(i == steps - 1)
        def _finalize():
            partial = jnp.sum(acc_ref[...] * sw_ref[...])   # one cross-lane dot
            out_ref[...] = jnp.full((1, 1, 128), partial, dtype=jnp.float32)

    # --- VMEM limit sized to actual usage (+ headroom). ---------------------
    d_lane = _round_up(D, 128)
    need = 2 * _round_up(row_tile, 8) * d_lane * lap_itemsize   # L double buffer
    need += 3 * 8 * d_lane * 4                                  # sw (x2) + acc
    need += 2 * 8 * 128 * 4                                     # out block
    vmem_limit = int(min(vmem_cap, max(need + (4 << 20), 16 << 20)))

    out = pl.pallas_call(
        kernel,
        out_shape=jax.ShapeDtypeStruct((num_splits, 1, 128), jnp.float32),
        grid=(num_splits, steps),
        in_specs=[
            # L row strips, native dtype, un-padded (last dim = full array dim)
            pl.BlockSpec((row_tile, D), lambda s, i: (s * steps + i, 0)),
            # lambda * colsum(|W|), resident (constant index map), tiny
            pl.BlockSpec((1, D), lambda s, i: (0, 0)),
        ],
        out_specs=pl.BlockSpec((1, 1, 128), lambda s, i: (s, 0, 0)),
        scratch_shapes=[pltpu.VMEM((1, D), jnp.float32)],        # colsum(L) acc
        compiler_params=pltpu.CompilerParams(
            dimension_semantics=("parallel", "arbitrary"),
            vmem_limit_bytes=vmem_limit),
        cost_estimate=pl.CostEstimate(
            flops=2 * D * D,
            transcendentals=0,
            bytes_accessed=D * D * lap_itemsize + D * 4 + num_splits * 512),
    )(laplacian_matrix, sw)

    # Sum the (<=2) per-split partial losses.
    return jnp.sum(out[:, 0, 0])


def _reference(laplacian_matrix, weights_matrix, lambda_reg):
    # Pure-JAX reference mirroring the PyTorch/numpy loop (matmul form).
    a = jnp.abs(weights_matrix.astype(jnp.float32))
    m = a @ laplacian_matrix.astype(jnp.float32).T
    return lambda_reg * jnp.sum(m)


if __name__ == "__main__":
    key = jax.random.PRNGKey(0)
    k_lap, k_w = jax.random.split(key)

    D = 44   # laplacian dim / weight-vector length (deliberately not 8/128
             # aligned to exercise the ragged-row-strip mask path)
    N = 8    # number of weight vectors (rows of weights_matrix)
    lambda_reg = 0.05

    # Synthetic symmetric graph; use a *shifted* Laplacian (L + 2I): a pure
    # Laplacian has exactly-zero column sums, so the loss is ~0 and an f32
    # check would be dominated by catastrophic cancellation.
    adj = jax.random.uniform(k_lap, (D, D), dtype=jnp.float32)
    adj = (adj + adj.T) * 0.5
    adj = adj * (1.0 - jnp.eye(D, dtype=jnp.float32))
    laplacian = (jnp.diag(jnp.sum(adj, axis=1)) - adj
                 + 2.0 * jnp.eye(D, dtype=jnp.float32))

    weights = jax.random.normal(k_w, (N, D), dtype=jnp.float32)

    ref = _reference(laplacian, weights, lambda_reg)

    # Tiled path: row_tile=8 -> 6 row blocks -> 2 "parallel" splits x 3
    # "arbitrary" steps, with the ragged last block masked in-kernel.
    loss_tiled = graph_regularized_loss(laplacian, weights, lambda_reg,
                                        row_tile=8)
    loss_tiled = jax.block_until_ready(loss_tiled)
    assert jnp.allclose(loss_tiled, ref, rtol=1e-4, atol=1e-4), (loss_tiled, ref)

    # Default (VMEM-budget-derived) path: whole L in one block, single step.
    loss_auto = graph_regularized_loss(laplacian, weights, lambda_reg)
    loss_auto = jax.block_until_ready(loss_auto)
    assert jnp.allclose(loss_auto, ref, rtol=1e-4, atol=1e-4), (loss_auto, ref)

    print("KERNEL_OK")
</pallas_src>

<mosaic_0001>
module attributes {stable_mosaic.version = 11 : i64} {
  func.func @kernel(%arg0: i32, %arg1: i32, %arg2: memref<8x44xf32, #tpu.memory_space<vmem>>, %arg3: memref<1x44xf32, #tpu.memory_space<vmem>>, %arg4: memref<1x1x128xf32, #tpu.memory_space<vmem>>, %arg5: memref<1x44xf32, #tpu.memory_space<vmem>>) attributes {dimension_semantics = [#tpu.dimension_semantics<parallel>, #tpu.dimension_semantics<arbitrary>], iteration_bounds = array<i64: 2, 3>, scalar_prefetch = 0 : i64, scratch_operands = 1 : i64, tpu.core_type = #tpu.core_type<tc>, window_params = [{transform_indices = @transform_0, window_bounds = array<i64: 8, 44>}, {pipeline_mode = #tpu.pipeline_mode<synchronous>, transform_indices = @transform_1, window_bounds = array<i64: 1, 44>}, {transform_indices = @transform_2, window_bounds = array<i64: 1, 1, 128>}]} {
    %c0_i32 = arith.constant 0 : i32
    %0 = arith.cmpi eq, %arg1, %c0_i32 : i32
    %1 = arith.extui %0 : i1 to i32
    %c0_i32_0 = arith.constant 0 : i32
    %2 = arith.cmpi ne, %1, %c0_i32_0 : i32
    scf.if %2 {
      %cst_8 = arith.constant 0.000000e+00 : f32
      %22 = vector.broadcast %cst_8 : f32 to vector<1x44xf32>
      %c0_9 = arith.constant 0 : index
      %c0_10 = arith.constant 0 : index
      %23 = vector.load %arg5[%c0_9, %c0_10] : memref<1x44xf32, #tpu.memory_space<vmem>>, vector<1x44xf32>
      tpu.vector_store %arg5[%c0_9, %c0_10], %22 {strides = array<i32>} : memref<1x44xf32, #tpu.memory_space<vmem>>, vector<1x44xf32>,
    } else {
    }
    %c0 = arith.constant 0 : index
    %c0_1 = arith.constant 0 : index
    %3 = vector.load %arg2[%c0, %c0_1] : memref<8x44xf32, #tpu.memory_space<vmem>>, vector<8x44xf32>
    %c3_i32 = arith.constant 3 : i32
    %4 = arith.muli %arg0, %c3_i32 : i32
    %5 = arith.addi %4, %arg1 : i32
    %6 = tpu.iota {dimensions = array<i32: 0>} : vector<8x44xi32>
    %c8_i32 = arith.constant 8 : i32
    %7 = arith.muli %5, %c8_i32 : i32
    %8 = vector.broadcast %7 : i32 to vector<8x44xi32>
    %9 = arith.addi %6, %8 : vector<8x44xi32>
    %c44_i32 = arith.constant 44 : i32
    %10 = vector.broadcast %c44_i32 : i32 to vector<8x44xi32>
    %11 = arith.cmpi slt, %9, %10 : vector<8x44xi32>
    %cst = arith.constant 0.000000e+00 : f32
    %12 = vector.broadcast %cst : f32 to vector<8x44xf32>
    %13 = arith.select %11, %3, %12 : vector<8x44xi1>, vector<8x44xf32>
    %c0_2 = arith.constant 0 : index
    %c0_3 = arith.constant 0 : index
    %14 = vector.load %arg5[%c0_2, %c0_3] : memref<1x44xf32, #tpu.memory_space<vmem>>, vector<1x44xf32>
    %cst_4 = arith.constant dense<0.000000e+00> : vector<44xf32>
    %15 = vector.multi_reduction <add>, %13, %cst_4 [0] : vector<8x44xf32> to vector<44xf32>
    %16 = vector.shape_cast %15 : vector<44xf32> to vector<1x44xf32>
    %17 = arith.addf %14, %16 : vector<1x44xf32>
    %c0_5 = arith.constant 0 : index
    %c0_6 = arith.constant 0 : index
    %18 = vector.load %arg5[%c0_5, %c0_6] : memref<1x44xf32, #tpu.memory_space<vmem>>, vector<1x44xf32>
    tpu.vector_store %arg5[%c0_5, %c0_6], %17 {strides = array<i32>} : memref<1x44xf32, #tpu.memory_space<vmem>>, vector<1x44xf32>,
    %c2_i32 = arith.constant 2 : i32
    %19 = arith.cmpi eq, %arg1, %c2_i32 : i32
    %20 = arith.extui %19 : i1 to i32
    %c0_i32_7 = arith.constant 0 : i32
    %21 = arith.cmpi ne, %20, %c0_i32_7 : i32
    scf.if %21 {
      %c0_8 = arith.constant 0 : index
      %c0_9 = arith.constant 0 : index
      %22 = vector.load %arg5[%c0_8, %c0_9] : memref<1x44xf32, #tpu.memory_space<vmem>>, vector<1x44xf32>
      %c0_10 = arith.constant 0 : index
      %c0_11 = arith.constant 0 : index
      %23 = vector.load %arg3[%c0_10, %c0_11] : memref<1x44xf32, #tpu.memory_space<vmem>>, vector<1x44xf32>
      %24 = arith.mulf %22, %23 : vector<1x44xf32>
      %25 = vector.shape_cast %24 : vector<1x44xf32> to vector<1x1x44xf32>
      %cst_12 = arith.constant dense<0.000000e+00> : vector<1xf32>
      %26 = vector.multi_reduction <add>, %25, %cst_12 [1, 2] : vector<1x1x44xf32> to vector<1xf32>
      %27 = vector.shape_cast %26 : vector<1xf32> to vector<1x1x1xf32>
      %28 = vector.extract %27[0, 0, 0] : f32 from vector<1x1x1xf32>
      %29 = vector.broadcast %28 : f32 to vector<1x1x128xf32>
      %c0_13 = arith.constant 0 : index
      %c0_14 = arith.constant 0 : index
      %c0_15 = arith.constant 0 : index
      %30 = vector.load %arg4[%c0_13, %c0_14, %c0_15] : memref<1x1x128xf32, #tpu.memory_space<vmem>>, vector<1x1x128xf32>
      tpu.vector_store %arg4[%c0_13, %c0_14, %c0_15], %29 {strides = array<i32>} : memref<1x1x128xf32, #tpu.memory_space<vmem>>, vector<1x1x128xf32>,
    } else {
    }
    return
  }
  func.func @transform_0(%arg0: i32, %arg1: i32) -> (i32, i32) {
    %c3_i32 = arith.constant 3 : i32
    %0 = arith.muli %arg0, %c3_i32 : i32
    %1 = arith.addi %0, %arg1 : i32
    %c0_i32 = arith.constant 0 : i32
    %c0_i32_0 = arith.constant 0 : i32
    return %1, %c0_i32 : i32, i32
  }
  func.func @transform_1(%arg0: i32, %arg1: i32) -> (i32, i32) {
    %c0_i32 = arith.constant 0 : i32
    %c0_i32_0 = arith.constant 0 : i32
    %c0_i32_1 = arith.constant 0 : i32
    return %c0_i32, %c0_i32_0 : i32, i32
  }
  func.func @transform_2(%arg0: i32, %arg1: i32) -> (i32, i32, i32) {
    %c0_i32 = arith.constant 0 : i32
    %c0_i32_0 = arith.constant 0 : i32
    %c0_i32_1 = arith.constant 0 : i32
    return %arg0, %c0_i32, %c0_i32_0 : i32, i32, i32
  }
}

</mosaic_0001>

<bundles_post_ra>
// kernel: tpu_custom_call.1
= control target key start
LH: loop header
LB: loop body
LE: loop exit
PB: predicated region body
PF: predicated region fallthrough
CT: control target
= control target key end

     0   :  { %s883_s0 = inlined_call_operand.hbm [shape: f32[44,44], index: 0, kind: input, shape index: {}]   ;;  %s884_s1 = inlined_call_operand.hbm [shape: f32[1,44], index: 1, kind: input, shape index: {}]   ;;  %s885_s2 = inlined_call_operand.hbm [shape: f32[2,1,128], index: 2, kind: output, shape index: {}]  }
   0x1   :  { %893 = sst [smem:[#allocation18_spill]] %s884_s1 }
   0x2   :  { %894 = sst [smem:[#allocation19_spill]] %s885_s2 }
   0x3   :  { %7 = vsyncpa [#allocation4], 0 }
   0x4   :  { %9 = vsyncpa [#allocation4 + $0x1], 0 }
   0x5   :  { %10 = vsyncpa [#allocation7], 0 }
   0x6   :  { %11 = vsyncpa [#allocation5], 0 }
   0x7   :  { %13 = vsyncpa [#allocation5 + $0x1], 0  ;;  %s680_s9 = smov 0   ;;  %s682_s10 = smov 0  }
   0x8   :  { %s684_s11 = smov 0   ;;  %s686_s12 = smov 0  }
   0x9   :  { %s688_s13 = smov 0   ;;  %s690_s14 = smov 0  }
   0xa   :  { %s692_s15 = smov 0   ;;  %s694_s16 = smov 0  }
   0xb   :  { %s696_s17 = smov 0   ;;  %s698_s18 = smov 0  }
   0xc   :  { %s700_s19 = smov 0  }
   0xd LB: > { %895 = sst [smem:[#allocation12_spill]] %s621_s9  ;;  %s344_s20 = sadd.s32 4294967295, %s661_s19   ;;  %s661_s19 = sphi %s700_s19, %s19_s19   ;;  %s657_s18 = sphi %s698_s18, %s926_s18   ;;  %s653_s17 = sphi %s696_s17, %s925_s17   ;;  %s649_s16 = sphi %s694_s16, %s924_s16   ;;  %s645_s15 = sphi %s692_s15, %s917_s15   ;;  %s641_s14 = sphi %s690_s14, %s923_s14   ;;  %s637_s13 = sphi %s688_s13, %s922_s13   ;;  %s633_s12 = sphi %s686_s12, %s921_s12   ;;  %s629_s11 = sphi %s684_s11, %s920_s11   ;;  %s625_s10 = sphi %s682_s10, %s919_s10   ;;  %s621_s9 = sphi %s680_s9, %s918_s9  }
   0xe   : > { %896 = sst [smem:[#allocation13_spill]] %s645_s15  ;;  %s345_s21 = sadd.s32 4294967294, %s661_s19  }
   0xf   : > { %897 = sst [smem:[#allocation14_spill]] %s649_s16  ;;  %p55_p0 = scmp.ne.s32.totalorder %s637_s13, %s633_s12 }
  0x10   : > { %898 = sst [smem:[#allocation15_spill]] %s653_s17  ;;  %p736_p1 = scmp.eq.s32.totalorder %s344_s20, 0 }
  0x11   : > { %p99_p2 = scmp.ne.s32.totalorder %s629_s11, %s625_s10  ;;  %p100_p4 = scmp.eq.s32.totalorder %s344_s20, 5 }
  0x12   : > { %p744_p3 = por %p736_p1, %p55_p0  ;;  %p105_p5 = scmp.ne.s32.totalorder %s625_s10, %s621_s9 }
  0x13   : > { %p106_p6 = scmp.eq.s32.totalorder %s345_s21, 5  ;;  %p750_p7 = por %p100_p4, %p99_p2 }
  0x14   : > { %p346_p8 = scmp.ge.s32.totalorder %s661_s19, 1  ;;  %p113_p10 = scmp.lt.s32.totalorder %s661_s19, 7 }
  0x15   : > { %s901_s24 = scalar_select %p750_p7, 1, 0 }
  0x16   : > { %p755_p9 = por %p106_p6, %p105_p5  ;;  %s905_s1 = sld [smem:[#allocation18_spill]] }
  0x17   : > { %902 = sst [smem:[#allocation16_spill]] %s901_s24  ;;  %p763_p11 = pnand %p346_p8, %p113_p10 }
  0x18   : > { %s903_s25 = scalar_select %p755_p9, 1, 0 }
  0x19   : > { %p369_p12 = pneg %p763_p11  ;;  %s663_s30 = smov [#allocation6]  }
  0x1a   : > { %904 = sst [smem:[#allocation17_spill]] %s903_s25  ;;  %s127_s3 = sshll.u32 %s663_s30, 4  ;;  %s128_s3 = int_to_ptr.vmem [resolvable:$true] %s127_s3 }
  0x1b   : > { %p370_p13 = pnand %p369_p12, %p736_p1  ;;  %s89_s4 = sadd.s32 1, %s629_s11 }
  0x1c   : > { %s125_s28 = sshll.u32 %s905_s1, 4  ;;  %s28_s5 = sadd.s32 1, %s653_s17  ;;  %s126_s28 = int_to_ptr.hbm [resolvable:$true] %s125_s28 }
  0x1d   : > { %372 = dma.hbm_to_vmem [thread:$0]  (!%p370_p13), %s126_s28, 16, %s128_s3, [#allocation7]  }
  0x1e   : > { %p29_p0 = scmp.ge.s32.totalorder %s28_s5, 3  ;;  %s31_s6 = sadd.s32 1, %s657_s18 }
  0x1f   : > { %s35_s7 = smul.u32 3, %s657_s18  ;;  %s42_s8 = sadd.s32 1, %s641_s14 }
  0x20   : > { %s928_s5 = smov (%p29_p0, %s28_s5), 0  ;;  %s930_s6 = smov (!%p29_p0, %s31_s6), %s657_s18 }
  0x21   : > { %p49_p2 = scmp.ne.s32.totalorder %s641_s14, %s637_s13  ;;  %p33_p4 = scmp.ge.s32.totalorder %s930_s6, 2 }
  0x22   : > { %p50_p5 = scmp.eq.s32.totalorder %s661_s19, 0  ;;  %s36_s12 = sadd.s32 %s653_s17, %s35_s7 }
  0x23   : > { %s138_s20 = sand.u32 1, %s641_s14   ;;  %s932_s6 = smov (%p33_p4, %s930_s6), 0 }
  0x24   : > { %p786_p6 = por %p50_p5, %p49_p2  ;;  %p382_p8 = scmp.lt.s32.totalorder %s661_s19, 6 }
  0x25   : > { %s37_s26 = smul.u32 3, %s932_s6  ;;  %s86_s27 = ssub.s32 %s657_s18, %s932_s6 }
  0x26   : > { %p87_p10 = scmp.eq.s32.totalorder %s86_s27, 0  ;;  %s349_s28 = sshll.u32 %s138_s20, 3 }
  0x27   : > { %s38_s30 = sadd.s32 %s37_s26, %s928_s5  ;;  %s350_s1 = sshll.u32 %s36_s12, 3 }
  0x28   : > { %s39_s3 = ssub.s32 %s36_s12, %s38_s30  ;;  %s148_s25 = scalar_lea.hbm %s883_s0, %s350_s1 }
  0x29   : > { %p40_p12 = scmp.eq.s32.totalorder %s39_s3, 0  ;;  %s150_s2 = sshll.u32 %s148_s25, 4  ;;  %s151_s2 = int_to_ptr.hbm [resolvable:$true] %s150_s2 }
  0x2a   : > { %s799_s9 = scalar_select %p87_p10, %s629_s11, %s89_s4  }
  0x2b   : > { %s802_s24 = scalar_select %p40_p12, %s641_s14, %s42_s8  }
  0x2c   : > { %s142_s16 = scalar_lea.vmem [#allocation3], %s349_s28  ;;  %p374_p13 = pnand %p382_p8, %p786_p6 }
  0x2d   : > { %s152_s15 = sshll.u32 %s142_s16, 4  ;;  %s139_s26 = scalar_lea.sflag [#allocation4], %s138_s20  ;;  %s153_s15 = int_to_ptr.vmem [resolvable:$true] %s152_s15 }
  0x2e   : > { %376 = dma.hbm_to_vmem [thread:$0]  (!%p374_p13), %s151_s2, 128, %s153_s15, %s139_s26  }
  0x2f   : > { %161 = sbr.rel (%p763_p11) target bundleno = 312 (0x138), region = 28  ;;  %s163_s1 = sand.u32 (!%p763_p11), 1, %s637_s13  }
  0x30   : > { %s352_s17 = sshll.u32 (!%p763_p11), %s163_s1, 3  ;;  %s164_s4 = scalar_lea.sflag (!%p763_p11), [#allocation4], %s163_s1 }
  0x31   : > { %s167_s8 = scalar_lea.vmem (!%p763_p11), [#allocation3], %s352_s17 }
  0x34   : > { %608 = dma.done.wait (%p744_p3), %s164_s4, 128  }
  0x35   : > { %610 = vsyncadd (%p744_p3), %s164_s4, 4294967168 }
  0x36   : > { %612 = dma.done.wait (%p736_p1), [#allocation7], 16  }
  0x37   : > { %614 = vsyncadd (%p736_p1), [#allocation7], 4294967280  ;;  %s191_s2 = sand.u32 1, %s625_s10   ;;  %s908_s16 = sld [smem:[#allocation13_spill]] }
  0x38   : > { %s822_s15 = scalar_lea.vmem [#allocation8], %s191_s2 }
  0x3d   : > { %p354_p11 = scmp.ne.s32.totalorder %s908_s16, 0 }
  0x3f   : > { %198 = sbr.rel (%p354_p11) target bundleno = 70 (0x46), region = 40 }
  0x44   : > { %vm199_vm0 = vcmask 352256   ;;  %v664_v0 = vmov 0.0  }
  0x45   : > { %200 = vst.msk [vmem:[#allocation2] sm:$0x1] %vm199_vm0, %v664_v0 }
  0x46 PF: > { %s909_s23 = sld [smem:[#allocation14_spill]]  ;;  %v204_v1 = vlaneseq  ;;  %v201_v4 = vld [vmem:[%s167_s8] sm:$0xff]  ;;  %vm212_vm1 = vcmask 359424   ;;  %vm221_vm3 = vcmask 352256  }
  0x47   : > { %s910_s25 = sld [smem:[#allocation13_spill]] }
  0x48   : > { %v205_v2 = vshrl.u32 %v204_v1, 7 }
  0x4c   : > { %s202_s29 = smul.u32 3, %s909_s23  ;;  %v211_v13 = vld [vmem:[#allocation2] sm:$0x1] }
  0x4d   : > { %p356_p1 = scmp.ne.s32.totalorder %s910_s25, 2 }
  0x4e   : > { %s203_s12 = sadd.s32 %s910_s25, %s202_s29 }
  0x4f   : > { %s355_s22 = sshll.u32 %s203_s12, 3 }
  0x50   : > { %v207_v3 = vstv %s355_s22 }
  0x51   : > { %v208_v5 = vadd.s32 %v207_v3, %v205_v2 }
  0x53   : > { %vm209_vm2 = vcmp.lt.s32.totalorder %v208_v5, 44 }
  0x54   : > { %v210_v6 = vsel %vm209_vm2, %v201_v4, 0.0 }
  0x55   : > { %v213_v7 = vsel %vm212_vm1, %v210_v6, 0.0 }
  0x56   : > { %v214_v8 = vrot.slane %v213_v7, 4 }
  0x58   : > { %v215_v9 = vadd.f32 %v214_v8, %v213_v7 }
  0x5a   : > { %v216_v10 = vrot.slane %v215_v9, 2 }
  0x5c   : > { %v217_v11 = vadd.f32 %v216_v10, %v215_v9 }
  0x5e   : > { %v218_v12 = vrot.slane %v217_v11, 1 }
  0x60   : > { %v219_v14 = vadd.f32 %v218_v12, %v217_v11  ;;  %226 = sbr.rel (%p356_p1) target bundleno = 291 (0x123), region = 44 }
  0x62   : > { %v220_v15 = vadd.f32 %v219_v14, %v211_v13 }
  0x64   : > { %222 = vst.msk [vmem:[#allocation2] sm:$0x1] %vm221_vm3, %v220_v15 }
  0x65   : > { %v228_v17 = vld [vmem:[#allocation6] sm:$0x1] }
  0x6b   : > { %v227_v16 = vld [vmem:[#allocation2] sm:$0x1] }
  0x6c   : > { %v229_v18 = vmul.f32 %v228_v17, %v227_v16 }
  0x6e   : > { %v230_v19 = vsel %vm221_vm3, %v229_v18, 0.0 }
  0x6f   : > { %231 = vadd.xlane.f32.xlu0 %v230_v19 }
  0xe2   : > { %v232_v20 = vpop.xlane.xlu0 %231 }
  0xe3   : > { %v233_v21 = vrot.slane %v232_v20, 4 }
  0xe5   : > { %v234_v22 = vadd.f32 %v233_v21, %v232_v20 }
  0xe7   : > { %v235_v23 = vrot.slane %v234_v22, 2 }
  0xe9   : > { %v236_v24 = vadd.f32 %v235_v23, %v234_v22 }
  0xeb   : > { %v237_v25 = vrot.slane %v236_v24, 1 }
  0xed   : > { %v238_v26 = vadd.f32 %v237_v25, %v236_v24 }
  0xef   : > { %359 = vpush %v238_v26 }
 0x120   : > { %s360_s20 = spop %359 }
 0x121   : > { %v240_v27 = vstv %s360_s20 }
 0x122   : > { %241 = vst [vmem:[%s822_s15] sm:$0x1] %v240_v27 }
 0x123 PF: > { %s911_s21 = sld [smem:[#allocation14_spill]]  ;;  %s253_s26 = sshll.u32 %s822_s15, 4  ;;  %s254_s26 = int_to_ptr.vmem [resolvable:$true] %s253_s26 }
 0x124   : > { %s912_s30 = sld [smem:[#allocation19_spill]]  ;;  %s243_s17 = scalar_lea.sflag [#allocation5], %s191_s2 }
 0x12a   : > { %s251_s7 = scalar_lea.hbm %s912_s30, %s911_s21  ;;  %s555_s25 = scalar_lea.hbm %s912_s30, 2 }
 0x12b   : > { %s255_s1 = sshll.u32 %s251_s7, 4  ;;  %s256_s1 = int_to_ptr.hbm [resolvable:$true] %s255_s1 }
 0x12c   : > { %s549_s4 = sshra.s32 %s256_s1, 4  ;;  %s550_s4 = int_to_ptr.hbm [resolvable:$true] %s549_s4 }
 0x12d   : > { %s551_s8 = scalar_lea.hbm %s550_s4, 1  ;;  %p556_p4 = scmp.lt.s32.totalorder %s550_s4, %s912_s30 }
 0x12e   : > { %p552_p3 = scmp.ne.s32.totalorder %s550_s4, %s551_s8  ;;  %p557_p5 = scmp.lt.s32.totalorder %s555_s25, %s551_s8 }
 0x130   : > { %p553_p0 = pnand %p552_p3, %p750_p7  ;;  %p558_p6 = por %p557_p5, %p556_p4 }
 0x132   : > { %p554_p2 = pneg %p553_p0 }
 0x134   : > { %p559_p8 = pnand %p558_p6, %p554_p2 }
 0x136   : > { %562 = shalt.err (!%p559_p8)
}
 0x137   : > { %367 = dma.vmem_to_hbm [thread:$0]  (%p750_p7), %s254_s26, 16, %s256_s1, %s243_s17  }
 0x138 PF: > { %s914_s2 = sld [smem:[#allocation12_spill]]  ;;  %p384_p10 = scmp.ge.s32.totalorder %s661_s19, 2 }
 0x13a   : > { %p378_p12 = pnand %p384_p10, %p755_p9 }
 0x13c   : > { %p379_p13 = pneg %p378_p12 }
 0x13e   : > { %s267_s22 = sand.u32 1, %s914_s2  }
 0x13f   : > { %s268_s20 = scalar_lea.sflag [#allocation5], %s267_s22 }
 0x140   : > { %616 = dma.done.wait (%p379_p13), %s268_s20, 16  }
 0x141   : > { %618 = vsyncadd (%p379_p13), %s268_s20, 4294967280  ;;  %s19_s19 = sadd.s32 1, %s661_s19   ;;  %s916_s21 = smov %s799_s9 }
 0x142   : > { %p16_p11 = scmp.ge.s32.totalorder %s19_s19, 8   ;;  %s917_s15 = sld [smem:[#allocation15_spill]] }
 0x143   : > { %s918_s9 = smov %s625_s10  ;;  %s919_s10 = smov %s629_s11 }
 0x144   : > { %s920_s11 = smov %s916_s21  ;;  %s921_s12 = smov %s637_s13 }
 0x145   : > { %s922_s13 = smov %s641_s14  ;;  %s923_s14 = smov %s802_s24 }
 0x146   : > { %s924_s16 = smov %s657_s18  ;;  %s925_s17 = smov %s928_s5 }
 0x147   : > { %s926_s18 = smov %s932_s6  ;;  %18 = sbr.rel (!%p16_p11) target bundleno = 13 (0xd), region = 85 }
 0x14c   :  { %273 = vsyncpa [#allocation4], 1 }
 0x14d   :  { %275 = vsyncpa [#allocation4 + $0x1], 1 }
 0x14e   :  { %276 = vsyncpa [#allocation7], 1 }
 0x14f   :  { %277 = vsyncpa [#allocation5], 1 }
 0x150   :  { %279 = vsyncpa [#allocation5 + $0x1], 1 }

</bundles_post_ra>
